<compile_context>
chip_gen: v5e
topology: v5e:2x2
jax: 0.10.0
libtpu: 0.0.40
codegen_flags: <defaults>
</compile_context>

<pallas_src>
import functools
import math

import jax
import jax.numpy as jnp
import numpy as np
from jax.experimental import pallas as pl
from jax.experimental.pallas import tpu as pltpu


_COMPILER_PARAMS = pltpu.CompilerParams(
    dimension_semantics=("parallel",),
    vmem_limit_bytes=32 * 1024 * 1024,
)


def _round_up(n, m):
    return ((n + m - 1) // m) * m


def _celu(v):
    # CELU with alpha=1; min() keeps the dead branch finite.
    return jnp.where(v > 0.0, v, jnp.exp(jnp.minimum(v, 0.0)) - 1.0)


# ----------------------------------------------------------------------------
# Pallas kernels
# ----------------------------------------------------------------------------
def _init_kernel(x_ref, w_ref, b_ref, s_ref, sh_ref, o_ref):
    # init 1x1 conv + CELU + folded BN (standalone path for block='all')
    h = x_ref[...].astype(jnp.bfloat16)
    y = jnp.dot(h, w_ref[...], preferred_element_type=jnp.float32) + b_ref[...]
    o_ref[...] = _celu(y) * s_ref[...] + sh_ref[...]


def _make_block_kernel(*, H, W, cmid, Wp, has_init, has_final):
    """Fused decoder block: 1x1 conv + CELU/BN -> PixelShuffle(2) -> 3x3 conv
    + CELU/BN, optionally preceded by the init 1x1 conv and followed by the
    final 3x3 conv + sigmoid.  Operates on one image (grid is over batch)."""
    H2, W2 = 2 * H, 2 * W
    L = H2 * Wp            # conv-output rows in padded-row indexing
    LS = L + 2 * Wp        # rows of the dx-merged slab

    def conv3x3(pad_ref, w_ref, b_row):
        # pad_ref: ((H2+2)*Wp + 8, C) f32, pixel (Y, X) at row (1+Y)*Wp + 1 + X.
        # w_ref  : (3, 3*C, n_out) bf16, w_ref[dy] = [w[dy,0]; w[dy,1]; w[dy,2]].
        # Returns (L, n_out) f32; row Y*Wp + X is output pixel (Y, X)
        # (columns X >= W2 are garbage and are never stored).
        # dx-merged slab (review item 4): only 2 misaligned loads remain
        # (instead of 6 misaligned tap slices).
        slab = jnp.concatenate(
            [pad_ref[dx:dx + LS, :] for dx in range(3)], axis=1
        ).astype(jnp.bfloat16)                                      # (LS, 3C)
        # dy taps are aligned slices (Wp % 8 == 0); register accumulation
        # (review item 2) seeded by the first tap's dot.
        acc = jnp.dot(slab[0:L, :], w_ref[0],
                      preferred_element_type=jnp.float32)
        acc = acc + jnp.dot(slab[Wp:Wp + L, :], w_ref[1],
                            preferred_element_type=jnp.float32)
        acc = acc + jnp.dot(slab[2 * Wp:2 * Wp + L, :], w_ref[2],
                            preferred_element_type=jnp.float32)
        return acc + b_row

    def kernel(*refs):
        it = iter(refs)
        x_ref = next(it)
        if has_init:
            wi, bi, si, shi = [next(it) for _ in range(4)]
        w1, b1, s1, sh1 = [next(it) for _ in range(4)]
        w2, b2, s2, sh2 = [next(it) for _ in range(4)]
        if has_final:
            wf, bf = next(it), next(it)
        o_ref = next(it)
        pad1 = next(it)
        pad2 = next(it) if has_final else None

        # ---- [init] + 1x1 conv + CELU + BN (BN folded through the shuffle) --
        if has_init:
            h = x_ref[...].astype(jnp.bfloat16)
            h = jnp.dot(h, wi[...], preferred_element_type=jnp.float32) + bi[...]
            h = (_celu(h) * si[...] + shi[...]).astype(jnp.bfloat16)
        else:
            h = x_ref[...]                                        # already bf16
        y = jnp.dot(h, w1[...], preferred_element_type=jnp.float32) + b1[...]
        y = _celu(y) * s1[...] + sh1[...]       # (H*W, 4*cmid) f32, cols (i,j,c)

        # ---- PixelShuffle(2) + zero-pad into pad1 ---------------------------
        # Row-interleave each upsampled row with a constant permutation matmul
        # (concat + dot only; no reshapes / strided stores).
        rr = jax.lax.broadcasted_iota(jnp.int32, (W2, W2), 0)
        cc = jax.lax.broadcasted_iota(jnp.int32, (W2, W2), 1)
        interleave = (cc == (rr % 2) * W + rr // 2).astype(jnp.float32)

        pad1[...] = jnp.zeros_like(pad1)
        for hh in range(H):
            for i in range(2):
                a = y[hh * W:(hh + 1) * W, (2 * i) * cmid:(2 * i + 1) * cmid]
                b = y[hh * W:(hh + 1) * W, (2 * i + 1) * cmid:(2 * i + 2) * cmid]
                row = jnp.dot(interleave, jnp.concatenate([a, b], axis=0),
                              preferred_element_type=jnp.float32)  # (W2, cmid)
                dst = (1 + 2 * hh + i) * Wp + 1
                pad1[dst:dst + W2, :] = row

        # ---- 3x3 conv + CELU + BN -------------------------------------------
        z = conv3x3(pad1, w2, b2[...])
        z = _celu(z) * s2[...] + sh2[...]                          # (L, cmid) f32

        if not has_final:
            zb = z.astype(o_ref.dtype)
            for Y in range(H2):                       # dense rows, no padding
                o_ref[Y * W2:(Y + 1) * W2, :] = zb[Y * Wp:Y * Wp + W2, :]
        else:
            # fuse the final 3x3 conv + exact sigmoid (block 5 only)
            pad2[...] = jnp.zeros_like(pad2)
            for Y in range(H2):
                dst = (1 + Y) * Wp + 1
                pad2[dst:dst + W2, :] = z[Y * Wp:Y * Wp + W2, :]
            f = conv3x3(pad2, wf, bf[...])                     # (L, out_ch) f32
            f = 1.0 / (1.0 + jnp.exp(-f))                      # exact sigmoid
            for Y in range(H2):
                o_ref[Y * W2:(Y + 1) * W2, :] = f[Y * Wp:Y * Wp + W2, :]

    return kernel


# ----------------------------------------------------------------------------
# Pallas wrappers
# ----------------------------------------------------------------------------
def _init_only(x, ip):
    bs, d = x.shape
    n = ip["w"].shape[1]
    return pl.pallas_call(
        _init_kernel,
        out_shape=jax.ShapeDtypeStruct((bs, n), jnp.float32),
        grid=(1,),
        in_specs=[pl.BlockSpec((bs, d), lambda i: (0, 0)),
                  pl.BlockSpec((d, n), lambda i: (0, 0)),
                  pl.BlockSpec((1, n), lambda i: (0, 0)),
                  pl.BlockSpec((1, n), lambda i: (0, 0)),
                  pl.BlockSpec((1, n), lambda i: (0, 0))],
        out_specs=pl.BlockSpec((bs, n), lambda i: (0, 0)),
        compiler_params=_COMPILER_PARAMS,
    )(x, ip["w"], ip["b"], ip["s"], ip["sh"])


def _run_block(act, blk, *, init_p=None, final_p=None):
    B, rows_in, cin = act.shape
    side = math.isqrt(rows_in)
    assert side * side == rows_in
    H = W = side
    cmid = blk["w2"].shape[-1]
    H2, W2 = 2 * H, 2 * W
    Wp = _round_up(W2 + 2, 8)          # padded row stride (sublane aligned)
    P = (H2 + 2) * Wp + 8              # padded scratch rows (+8 slack for taps)
    has_init = init_p is not None
    has_final = final_p is not None

    operands = [act]
    in_specs = [pl.BlockSpec((None, rows_in, cin), lambda b: (b, 0, 0))]

    def add(arr):
        operands.append(arr)
        if arr.ndim == 2:
            in_specs.append(pl.BlockSpec(arr.shape, lambda b: (0, 0)))
        else:
            in_specs.append(pl.BlockSpec(arr.shape, lambda b: (0, 0, 0)))

    if has_init:
        for k in ("w", "b", "s", "sh"):
            add(init_p[k])
    for k in ("w1", "b1", "s1", "sh1", "w2", "b2", "s2", "sh2"):
        add(blk[k])
    if has_final:
        add(final_p["w"])
        add(final_p["b"])

    out_rows = H2 * W2
    if has_final:
        out_c, out_dtype = final_p["w"].shape[-1], jnp.float32
    else:
        out_c, out_dtype = cmid, jnp.bfloat16

    scratch = [pltpu.VMEM((P, cmid), jnp.float32)]
    if has_final:
        scratch.append(pltpu.VMEM((P, cmid), jnp.float32))

    kernel = _make_block_kernel(H=H, W=W, cmid=cmid, Wp=Wp,
                                has_init=has_init, has_final=has_final)
    return pl.pallas_call(
        kernel,
        out_shape=jax.ShapeDtypeStruct((B, out_rows, out_c), out_dtype),
        grid=(B,),
        in_specs=in_specs,
        out_specs=pl.BlockSpec((None, out_rows, out_c), lambda b: (b, 0, 0)),
        scratch_shapes=scratch,
        compiler_params=_COMPILER_PARAMS,
    )(*operands)


# ----------------------------------------------------------------------------
# BN folding & parameter preparation (one-time)
# ----------------------------------------------------------------------------
def _fold_bn(bn, eps=1e-5):
    scale = bn["gamma"] / jnp.sqrt(bn["var"] + eps)
    return scale, bn["beta"] - bn["mean"] * scale


def prepare_params(params):
    prep = {}
    p = params["init"]
    s, sh = _fold_bn(p["bn"])
    prep["init"] = {"w": p["w"].astype(jnp.bfloat16),
                    "b": p["b"].reshape(1, -1),
                    "s": s.reshape(1, -1),
                    "sh": sh.reshape(1, -1)}

    blocks = []
    for blk in params["to_x_blocks"]:
        cmid = blk["c_mid"]
        # permute 1x1-conv output columns from PyTorch PixelShuffle order
        # (c, i, j) to the kernel's phase-major (i, j, c) order.
        perm = np.arange(4 * cmid).reshape(cmid, 2, 2).transpose(1, 2, 0).reshape(-1)
        s1, sh1 = _fold_bn(blk["bn1"])
        s2, sh2 = _fold_bn(blk["bn2"])
        blocks.append({
            "w1": blk["conv1_w"][:, perm].astype(jnp.bfloat16),
            "b1": blk["conv1_b"][perm].reshape(1, -1),
            "s1": jnp.tile(s1, 4).reshape(1, -1),     # BN(cmid) after shuffle
            "sh1": jnp.tile(sh1, 4).reshape(1, -1),
            "w2": blk["conv2_w"].reshape(3, 3 * cmid, cmid).astype(jnp.bfloat16),
            "b2": blk["conv2_b"].reshape(1, -1),
            "s2": s2.reshape(1, -1),
            "sh2": sh2.reshape(1, -1),
        })
    prep["blocks"] = blocks

    fw = params["final"]["w"]                         # (3, 3, 16, out_ch)
    prep["final"] = {"w": fw.reshape(3, 3 * fw.shape[2], fw.shape[3]).astype(jnp.bfloat16),
                     "b": params["final"]["b"].reshape(1, -1)}
    return prep


# ----------------------------------------------------------------------------
# Deterministic synthetic parameters (shapes per ImageDecoder.__init__)
# ----------------------------------------------------------------------------
def _init_params(key, input_size, out_ch):
    keys = iter(jax.random.split(key, 96))

    def conv(cin, cout, k):
        fan_in = cin * k * k
        shape = (cin, cout) if k == 1 else (k, k, cin, cout)
        w = jax.random.normal(next(keys), shape, jnp.float32) / math.sqrt(fan_in)
        b = 0.1 * jax.random.normal(next(keys), (cout,), jnp.float32)
        return {"w": w, "b": b}

    def bn(c):
        return {
            "gamma": 1.0 + 0.1 * jax.random.normal(next(keys), (c,), jnp.float32),
            "beta": 0.1 * jax.random.normal(next(keys), (c,), jnp.float32),
            "mean": 0.1 * jax.random.normal(next(keys), (c,), jnp.float32),
            "var": jnp.exp(0.1 * jax.random.normal(next(keys), (c,), jnp.float32)),
        }

    params = {"init": {**conv(input_size, 256, 1), "bn": bn(256)}}
    blocks = []
    for cin, cmid in [(256, 128), (128, 128), (128, 64), (64, 32), (32, 16)]:
        c1 = conv(cin, cmid * 4, 1)
        c2 = conv(cmid, cmid, 3)
        blocks.append({"c_mid": cmid,
                       "conv1_w": c1["w"], "conv1_b": c1["b"], "bn1": bn(cmid),
                       "conv2_w": c2["w"], "conv2_b": c2["b"], "bn2": bn(cmid)})
    params["to_x_blocks"] = blocks
    params["final"] = conv(16, out_ch, 3)
    return params


# ----------------------------------------------------------------------------
# Forward pass (mirrors ImageDecoder.forward)
# ----------------------------------------------------------------------------
@functools.partial(jax.jit, static_argnames=("out_ch", "block"))
def image_decoder_forward(prepared, x, out_ch, block="all"):
    bs = x.shape[0]
    init = prepared["init"]
    if block != "to_x":
        h = _init_only(x, init)
        return h.reshape(bs, 256, 1, 1)                 # PyTorch NCHW

    act = x.reshape(bs, 1, x.shape[1])                  # (B, 1 pixel, dim)
    blocks = prepared["blocks"]
    for bi, blk in enumerate(blocks):
        act = _run_block(
            act, blk,
            init_p=init if bi == 0 else None,
            final_p=prepared["final"] if bi == len(blocks) - 1 else None)
    side = math.isqrt(act.shape[1])
    out = act.reshape(bs, side, side, act.shape[2])
    return jnp.transpose(out, (0, 3, 1, 2))             # NCHW


# ----------------------------------------------------------------------------
# Pure-JAX reference (PyTorch op order, same bf16 rounding points)
# ----------------------------------------------------------------------------
def _ref_pixel_shuffle(x_nhwc, r=2):
    B, H, W, C4 = x_nhwc.shape
    C = C4 // (r * r)
    x = x_nhwc.reshape(B, H, W, C, r, r)
    x = jnp.transpose(x, (0, 1, 4, 2, 5, 3))
    return x.reshape(B, H * r, W * r, C)


def _ref_conv3(x_nhwc, w, b):
    B, H, W, _ = x_nhwc.shape
    xb = x_nhwc.astype(jnp.bfloat16).astype(jnp.float32)
    wb = w.astype(jnp.bfloat16).astype(jnp.float32)
    xp = jnp.pad(xb, ((0, 0), (1, 1), (1, 1), (0, 0)))
    out = jnp.zeros((B, H, W, w.shape[-1]), jnp.float32)
    for dy in range(3):
        for dx in range(3):
            out = out + jnp.einsum("bhwc,cd->bhwd", xp[:, dy:dy + H, dx:dx + W, :],
                                   wb[dy, dx], precision=jax.lax.Precision.HIGHEST)
    return out + b


def _reference_forward(params, x, block="all"):
    def celu(v):
        return jnp.where(v > 0.0, v, jnp.exp(jnp.minimum(v, 0.0)) - 1.0)

    def bn(v, p):
        return (v - p["mean"]) / jnp.sqrt(p["var"] + 1e-5) * p["gamma"] + p["beta"]

    def mm(a, w):  # bf16 operands, f32 accumulation (matches the kernels)
        return jnp.einsum("...c,cd->...d",
                          a.astype(jnp.bfloat16).astype(jnp.float32),
                          w.astype(jnp.bfloat16).astype(jnp.float32),
                          precision=jax.lax.Precision.HIGHEST)

    bs = x.shape[0]
    p0 = params["init"]
    h = mm(x, p0["w"]) + p0["b"]
    h = bn(celu(h), p0["bn"])
    if block != "to_x":
        return h.reshape(bs, 256, 1, 1)
    act = h.reshape(bs, 1, 1, 256)
    for blk in params["to_x_blocks"]:
        y = mm(act, blk["conv1_w"]) + blk["conv1_b"]
        y = _ref_pixel_shuffle(y, 2)
        y = bn(celu(y), blk["bn1"])
        y = _ref_conv3(y, blk["conv2_w"], blk["conv2_b"])
        y = bn(celu(y), blk["bn2"])
        act = y
    out = _ref_conv3(act, params["final"]["w"], params["final"]["b"])
    out = 1.0 / (1.0 + jnp.exp(-out))
    return jnp.transpose(out, (0, 3, 1, 2))


# ----------------------------------------------------------------------------
if __name__ == "__main__":
    key = jax.random.PRNGKey(0)
    pkey, xkey = jax.random.split(key)

    input_size, out_ch, dyn_dim = 32, 3, 8   # dyn_dim is stored but unused in forward
    bs = 2

    params = _init_params(pkey, input_size, out_ch)
    prepared = prepare_params(params)
    x = jax.random.normal(xkey, (bs, input_size), jnp.float32)

    out_all = image_decoder_forward(prepared, x, out_ch=out_ch, block="all")
    out_tox = image_decoder_forward(prepared, x, out_ch=out_ch, block="to_x")
    jax.block_until_ready((out_all, out_tox))

    assert out_all.shape == (bs, 256, 1, 1), out_all.shape
    assert out_tox.shape == (bs, out_ch, 32, 32), out_tox.shape
    assert bool(jnp.all(jnp.isfinite(out_all))) and bool(jnp.all(jnp.isfinite(out_tox)))
    assert bool(jnp.all((out_tox >= 0.0) & (out_tox <= 1.0)))   # sigmoid range

    ref_fwd = jax.jit(_reference_forward, static_argnames=("block",))
    ref_all = ref_fwd(params, x, block="all")
    ref_tox = ref_fwd(params, x, block="to_x")
    assert float(jnp.max(jnp.abs(out_all - ref_all))) < 1e-2
    assert float(jnp.max(jnp.abs(out_tox - ref_tox))) < 1e-2

    print("KERNEL_OK")
</pallas_src>

<mosaic_0001>
module attributes {stable_mosaic.version = 11 : i64} {
  func.func @_init_kernel(%arg0: i32, %arg1: memref<2x32xf32, #tpu.memory_space<vmem>>, %arg2: memref<32x256xbf16, #tpu.memory_space<vmem>>, %arg3: memref<1x256xf32, #tpu.memory_space<vmem>>, %arg4: memref<1x256xf32, #tpu.memory_space<vmem>>, %arg5: memref<1x256xf32, #tpu.memory_space<vmem>>, %arg6: memref<2x256xf32, #tpu.memory_space<vmem>>) attributes {dimension_semantics = [#tpu.dimension_semantics<parallel>], iteration_bounds = array<i64: 1>, scalar_prefetch = 0 : i64, scratch_operands = 0 : i64, tpu.core_type = #tpu.core_type<tc>, window_params = [{pipeline_mode = #tpu.pipeline_mode<synchronous>, transform_indices = @transform_0, window_bounds = array<i64: 2, 32>}, {pipeline_mode = #tpu.pipeline_mode<synchronous>, transform_indices = @transform_1, window_bounds = array<i64: 32, 256>}, {pipeline_mode = #tpu.pipeline_mode<synchronous>, transform_indices = @transform_2, window_bounds = array<i64: 1, 256>}, {pipeline_mode = #tpu.pipeline_mode<synchronous>, transform_indices = @transform_3, window_bounds = array<i64: 1, 256>}, {pipeline_mode = #tpu.pipeline_mode<synchronous>, transform_indices = @transform_4, window_bounds = array<i64: 1, 256>}, {pipeline_mode = #tpu.pipeline_mode<synchronous>, transform_indices = @transform_5, window_bounds = array<i64: 2, 256>}]} {
    %c0 = arith.constant 0 : index
    %c0_0 = arith.constant 0 : index
    %0 = vector.load %arg1[%c0, %c0_0] : memref<2x32xf32, #tpu.memory_space<vmem>>, vector<2x32xf32>
    %1 = arith.truncf %0 : vector<2x32xf32> to vector<2x32xbf16>
    %c0_1 = arith.constant 0 : index
    %c0_2 = arith.constant 0 : index
    %2 = vector.load %arg2[%c0_1, %c0_2] : memref<32x256xbf16, #tpu.memory_space<vmem>>, vector<32x256xbf16>
    %cst = arith.constant dense<0.000000e+00> : vector<2x256xf32>
    %3 = tpu.matmul %1, %2, %cst {dimension_numbers = #tpu.dot_dimension_numbers<[1], [0], [0], [1], [0, 0, 1, 1], [], []>} : vector<2x32xbf16>, vector<32x256xbf16>, vector<2x256xf32> -> vector<2x256xf32>
    %c0_3 = arith.constant 0 : index
    %c0_4 = arith.constant 0 : index
    %4 = vector.load %arg3[%c0_3, %c0_4] : memref<1x256xf32, #tpu.memory_space<vmem>>, vector<1x256xf32>
    %5 = vector.broadcast %4 : vector<1x256xf32> to vector<2x256xf32>
    %6 = arith.addf %3, %5 : vector<2x256xf32>
    %cst_5 = arith.constant 0.000000e+00 : f32
    %7 = vector.broadcast %cst_5 : f32 to vector<2x256xf32>
    %8 = arith.cmpf ogt, %6, %7 : vector<2x256xf32>
    %cst_6 = arith.constant 0.000000e+00 : f32
    %9 = vector.broadcast %cst_6 : f32 to vector<2x256xf32>
    %10 = arith.minimumf %6, %9 : vector<2x256xf32>
    %11 = math.exp %10 : vector<2x256xf32>
    %cst_7 = arith.constant 1.000000e+00 : f32
    %12 = vector.broadcast %cst_7 : f32 to vector<2x256xf32>
    %13 = arith.subf %11, %12 : vector<2x256xf32>
    %14 = arith.select %8, %6, %13 : vector<2x256xi1>, vector<2x256xf32>
    %c0_8 = arith.constant 0 : index
    %c0_9 = arith.constant 0 : index
    %15 = vector.load %arg4[%c0_8, %c0_9] : memref<1x256xf32, #tpu.memory_space<vmem>>, vector<1x256xf32>
    %16 = vector.broadcast %15 : vector<1x256xf32> to vector<2x256xf32>
    %17 = arith.mulf %14, %16 : vector<2x256xf32>
    %c0_10 = arith.constant 0 : index
    %c0_11 = arith.constant 0 : index
    %18 = vector.load %arg5[%c0_10, %c0_11] : memref<1x256xf32, #tpu.memory_space<vmem>>, vector<1x256xf32>
    %19 = vector.broadcast %18 : vector<1x256xf32> to vector<2x256xf32>
    %20 = arith.addf %17, %19 : vector<2x256xf32>
    %c0_12 = arith.constant 0 : index
    %c0_13 = arith.constant 0 : index
    %21 = vector.load %arg6[%c0_12, %c0_13] : memref<2x256xf32, #tpu.memory_space<vmem>>, vector<2x256xf32>
    tpu.vector_store %arg6[%c0_12, %c0_13], %20 {strides = array<i32>} : memref<2x256xf32, #tpu.memory_space<vmem>>, vector<2x256xf32>,
    return
  }
  func.func @transform_0(%arg0: i32) -> (i32, i32) {
    %c0_i32 = arith.constant 0 : i32
    %c0_i32_0 = arith.constant 0 : i32
    %c0_i32_1 = arith.constant 0 : i32
    return %c0_i32, %c0_i32_0 : i32, i32
  }
  func.func @transform_1(%arg0: i32) -> (i32, i32) {
    %c0_i32 = arith.constant 0 : i32
    %c0_i32_0 = arith.constant 0 : i32
    %c0_i32_1 = arith.constant 0 : i32
    return %c0_i32, %c0_i32_0 : i32, i32
  }
  func.func @transform_2(%arg0: i32) -> (i32, i32) {
    %c0_i32 = arith.constant 0 : i32
    %c0_i32_0 = arith.constant 0 : i32
    %c0_i32_1 = arith.constant 0 : i32
    return %c0_i32, %c0_i32_0 : i32, i32
  }
  func.func @transform_3(%arg0: i32) -> (i32, i32) {
    %c0_i32 = arith.constant 0 : i32
    %c0_i32_0 = arith.constant 0 : i32
    %c0_i32_1 = arith.constant 0 : i32
    return %c0_i32, %c0_i32_0 : i32, i32
  }
  func.func @transform_4(%arg0: i32) -> (i32, i32) {
    %c0_i32 = arith.constant 0 : i32
    %c0_i32_0 = arith.constant 0 : i32
    %c0_i32_1 = arith.constant 0 : i32
    return %c0_i32, %c0_i32_0 : i32, i32
  }
  func.func @transform_5(%arg0: i32) -> (i32, i32) {
    %c0_i32 = arith.constant 0 : i32
    %c0_i32_0 = arith.constant 0 : i32
    %c0_i32_1 = arith.constant 0 : i32
    return %c0_i32, %c0_i32_0 : i32, i32
  }
}

</mosaic_0001>

<bundles_post_ra>
// kernel: image_decoder_forward.1
= control target key start
LH: loop header
LB: loop body
LE: loop exit
PB: predicated region body
PF: predicated region fallthrough
CT: control target
= control target key end

     0   :  { %10 = vsyncpa [#allocation3], 0  ;;  %s372_s0 = inlined_call_operand.vmem [shape: f32[2,32], index: 0, kind: input, shape index: {}]   ;;  %s373_s1 = inlined_call_operand.hbm [shape: bf16[32,256], index: 1, kind: input, shape index: {}]   ;;  %s374_s2 = inlined_call_operand.hbm [shape: f32[1,256], index: 2, kind: input, shape index: {}]   ;;  %s375_s3 = inlined_call_operand.hbm [shape: f32[1,256], index: 3, kind: input, shape index: {}]   ;;  %s376_s4 = inlined_call_operand.hbm [shape: f32[1,256], index: 4, kind: input, shape index: {}]   ;;  %s377_s5 = inlined_call_operand.vmem [shape: f32[2,256], index: 5, kind: output, shape index: {}]  }
   0x1   :  { %11 = vsyncpa [#allocation5], 0  ;;  %s33_s20 = sshll.u32 %s374_s2, 4  ;;  %s34_s20 = int_to_ptr.hbm [resolvable:$true] %s33_s20 }
   0x2   :  { %12 = vsyncpa [#allocation8], 0  ;;  %s318_s21 = smov [#allocation4]   ;;  %s19_s25 = sshll.u32 %s373_s1, 4  ;;  %s20_s25 = int_to_ptr.hbm [resolvable:$true] %s19_s25 }
   0x3   :  { %s35_s22 = sshll.u32 %s318_s21, 4  ;;  %s319_s26 = smov [#allocation2]   ;;  %s36_s22 = int_to_ptr.vmem [resolvable:$true] %s35_s22 }
   0x4   :  { %38 = dma.hbm_to_vmem [thread:$0]  %s34_s20, 32, %s36_s22, [#allocation5]  }
   0x5   :  { %s21_s27 = sshll.u32 %s319_s26, 4  ;;  %s320_s28 = smov 128   ;;  %s22_s27 = int_to_ptr.vmem [resolvable:$true] %s21_s27 }
   0x6   :  { %s321_s29 = smov 8   ;;  %s44_s2 = sshll.u32 %s375_s3, 4  ;;  %s45_s2 = int_to_ptr.hbm [resolvable:$true] %s44_s2 }
   0x7   :  { %27 = dma.hbm_to_vmem [thread:$0]  %s20_s25, 512, %s22_s27, [#allocation3], %s320_s28, %s320_s28, %s321_s29  }
   0x8   :  { %s322_s7 = smov [#allocation6]   ;;  %s55_s1 = sshll.u32 %s376_s4, 4  ;;  %s56_s1 = int_to_ptr.hbm [resolvable:$true] %s55_s1 }
   0x9   :  { %s46_s8 = sshll.u32 %s322_s7, 4  ;;  %s323_s11 = smov [#allocation7]   ;;  %s47_s8 = int_to_ptr.vmem [resolvable:$true] %s46_s8 }
   0xa   :  { %49 = dma.hbm_to_vmem [thread:$0]  %s45_s2, 32, %s47_s8, [#allocation5]  }
   0xb   :  { %s57_s12 = sshll.u32 %s323_s11, 4  ;;  %s58_s12 = int_to_ptr.vmem [resolvable:$true] %s57_s12 }
   0xc   :  { %60 = dma.hbm_to_vmem [thread:$0]  %s56_s1, 32, %s58_s12, [#allocation8]  }
   0xd   :  { %312 = dma.done.wait [#allocation3], 512  }
   0xe   :  { %313 = vsyncadd [#allocation3], 4294966784 }
   0xf   :  { %314 = dma.done.wait [#allocation5], 64  }
  0x10   :  { %315 = vsyncadd [#allocation5], 4294967232 }
  0x11   :  { %316 = dma.done.wait [#allocation8], 32  }
  0x12   :  { %317 = vsyncadd [#allocation8], 4294967264  ;;  %v192_v0 = vld [vmem:[#allocation2 + $0x10] sm:$0xf]  ;;  %v205_v1 = vld [vmem:[#allocation2 + $0x14] sm:$0xf0] }
  0x13   :  { %v204_v2 = vld [vmem:[#allocation2 + $0x14] sm:$0xf]  ;;  %v193_v3 = vor.u32 %v205_v1, %v192_v0  ;;  %v194_v4 = vld [vmem:[#allocation2 + $0x18] sm:$0xf0]  ;;  %v184_v5 = vld [vmem:[#allocation2] sm:$0xf] }
  0x14   :  { %v203_v6 = vld [vmem:[#allocation2 + $0x4] sm:$0xf0]  ;;  %v197_v7 = vor.u32 %v204_v2, %v194_v4  ;;  %v202_v8 = vld [vmem:[#allocation2 + $0x4] sm:$0xf]  ;;  %v186_v9 = vld [vmem:[#allocation2 + $0x8] sm:$0xf0] }
  0x15   :  { %120 = vmatpush.bf16.msra.mxu0 %v193_v3  ;;  %v185_v10 = vor.u32 %v203_v6, %v184_v5  ;;  %v78_v11 = vld [vmem:[%s372_s0] sm:$0x3]  ;;  %v189_v12 = vor.u32 %v202_v8, %v186_v9  ;;  %vm110_vm0 = vcmask 261120   ;;  %v84_v14 = vld [vmem:[#allocation4] sm:$0x3]  ;;  %vm171_vm3 = vcmask 1041408  }
  0x16   :  { %133 = vmatpush.bf16.msra.mxu1 %v197_v7  ;;  %v79_v13 = vpack.c.bf16 %v78_v11, %v78_v11  ;;  %v86_v15 = vperm.slane %v84_v14, 0  ;;  %v87_v16 = vperm.slane %v84_v14, 1  ;;  %v152_v27 = vld [vmem:[#allocation6] sm:$0x3]  ;;  %v160_v29 = vld [vmem:[#allocation7] sm:$0x3] }
  0x17   :  { %v154_v32 = vperm.slane %v152_v27, 0  ;;  %v155_v33 = vperm.slane %v152_v27, 1  ;;  %v163_v36 = vperm.slane %v160_v29, 1  ;;  %v162_v39 = vperm.slane %v160_v29, 0 }
  0x19   :  { %121 = vmatpush.bf16.msra.mxu0 %v185_v10 }
  0x1a   :  { %134 = vmatpush.bf16.msra.mxu1 %v189_v12 }
  0x1c   :  { %198 = vmatmul.msk.bf16.vlgmr.msra.gmra.mxu0 %vm110_vm0, %v79_v13 }
  0x1d   :  { %199 = vmatmul.msk.bf16.vlgmr.msra.gmra.mxu1 %vm110_vm0, %v79_v13 }
  0x99   :  { %v123_v17 = vpop.f32.mrf.mxu0 }
  0x9a   :  { %v124_v18 = vadd.f32 %v123_v17, %v86_v15  ;;  %v136_v19 = vpop.f32.mrf.mxu1 }
  0x9b   :  { %v137_v20 = vadd.f32 %v136_v19, %v87_v16 }
  0x9c   :  { %v142_v21 = vmin.f32 %v124_v18, 0.0  ;;  %vm140_vm1 = vcmp.gt.f32.partialorder %v124_v18, 0.0 }
  0x9d   :  { %v143_v22 = vmin.f32 %v137_v20, 0.0  ;;  %vm141_vm2 = vcmp.gt.f32.partialorder %v137_v20, 0.0 }
  0x9e   :  { %v144_v23 = vmul.f32 1.442695, %v142_v21 }
  0x9f   :  { %v146_v24 = vmul.f32 1.442695, %v143_v22 }
  0xa0   :  { %212 = vpow2.f32 %v144_v23 }
  0xa1   :  { %214 = vpow2.f32 %v146_v24  ;;  %v125_v25 = vpop.f32.mrf.mxu0 }
  0xa2   :  { %v138_v26 = vpop.f32.mrf.mxu1 }
  0xa6   :  { %v213_v28 = vpop.eup %212 }
  0xa7   :  { %v215_v30 = vpop.eup %214  ;;  %v200_v31 = vadd.f32 -1.0, %v213_v28 }
  0xa8   :  { %v201_v34 = vadd.f32 -1.0, %v215_v30 }
  0xa9   :  { %v150_v35 = vsel %vm140_vm1, %v124_v18, %v200_v31 }
  0xaa   :  { %v151_v37 = vsel %vm141_vm2, %v137_v20, %v201_v34  ;;  %v158_v38 = vmul.f32 %v154_v32, %v150_v35 }
  0xab   :  { %v159_v40 = vmul.f32 %v155_v33, %v151_v37 }
  0xac   :  { %v166_v42 = vadd.f32 %v162_v39, %v158_v38 }
  0xad   :  { %v167_v41 = vadd.f32 %v163_v36, %v159_v40 }
  0xaf   :  { %v170_v43 = vrot.slane %v167_v41, 6 }
  0xb1   :  { %v172_v44 = vsel %vm171_vm3, %v166_v42, %v170_v43 }
  0xb2   :  { %174 = vst [vmem:[%s377_s5] sm:$0xf] %v172_v44 }
  0xb3   :  { %179 = vsyncpa [#allocation3], 1 }
  0xb4   :  { %180 = vsyncpa [#allocation5], 1 }
  0xb5   :  { %181 = vsyncpa [#allocation8], 1 }

</bundles_post_ra>
